<compile_context>
chip_gen: v5e
topology: v5e:2x2
jax: 0.10.0
libtpu: 0.0.40
codegen_flags: <defaults>
</compile_context>

<pallas_src>
import functools

import jax
import jax.numpy as jnp
from jax.experimental import pallas as pl
from jax.experimental.pallas import tpu as pltpu


def _round_up(x, m):
    return ((x + m - 1) // m) * m


def _cdiv(a, b):
    return (a + b - 1) // b


def _mean_rows_kernel(x_ref, o_ref, acc_ref, *, inv_l, l_total, tk, mask_tail):
    """Grid = (row blocks, L blocks). fp32 row-sum accumulation over L."""
    k = pl.program_id(1)

    @pl.when(k == 0)
    def _():
        acc_ref[...] = jnp.zeros_like(acc_ref)

    x = x_ref[...]
    if mask_tail:
        # Last L block is partial: out-of-range tail columns hold undefined
        # data (no jnp.pad pre-pass any more), so zero them before summing.
        col = jax.lax.broadcasted_iota(jnp.int32, x.shape, 1) + k * tk
        x = jnp.where(col < l_total, x, jnp.zeros_like(x))

    # (TM, 1) keepdims sum: no per-step sublane->lane relayout, and fp32
    # accumulation without materializing an fp32 copy of the tile.
    acc_ref[...] += jnp.sum(x, axis=-1, keepdims=True, dtype=jnp.float32)

    @pl.when(k == pl.num_programs(1) - 1)
    def _():
        o_ref[...] = (acc_ref[...] * inv_l).astype(o_ref.dtype)


def mean_rows(x2d, *, block_bytes=8 << 20, max_tk=32768):
    """Row means of a (R, L) array via a tiled, pipelined Pallas TPU kernel."""
    R, L = (int(d) for d in x2d.shape)
    dtype = x2d.dtype
    itemsize = jnp.dtype(dtype).itemsize
    sublane = max(8, 32 // itemsize)      # 8 for f32, 16 for bf16, 32 for i8

    # Row tile: as large as possible (up to 512 rows), but keep >= 2 row
    # blocks whenever we can so the "parallel" axis shards across v7x cores.
    TM = min(_round_up(R, sublane), 512)
    if R > sublane and _cdiv(R, TM) < 2:
        TM = _round_up(_cdiv(R, 2), sublane)

    # Lane tile: full extent when it fits the byte budget (exempt from the
    # 128-divisibility rule, no masking needed); otherwise a 128-multiple
    # with in-kernel tail masking.
    tk_budget = max(128, block_bytes // (TM * itemsize))
    tk_budget = min(tk_budget, max_tk)
    if L <= tk_budget:
        TK = L
        mask_tail = False
    else:
        TK = (tk_budget // 128) * 128
        mask_tail = (L % TK) != 0

    grid = (_cdiv(R, TM), _cdiv(L, TK))

    kernel = functools.partial(
        _mean_rows_kernel,
        inv_l=1.0 / float(L),
        l_total=L,
        tk=TK,
        mask_tail=mask_tail,
    )

    # Double-buffered input + output blocks + accumulator, plus margin.
    in_block_bytes = TM * TK * itemsize
    out_block_bytes = TM * itemsize
    needed_vmem = 2 * in_block_bytes + 2 * out_block_bytes + TM * 4
    vmem_limit = int(min(max(needed_vmem + (2 << 20), 16 << 20), 48 << 20))

    out = pl.pallas_call(
        kernel,
        out_shape=jax.ShapeDtypeStruct((R, 1), dtype),
        grid_spec=pltpu.PrefetchScalarGridSpec(
            num_scalar_prefetch=0,
            grid=grid,
            in_specs=[pl.BlockSpec((TM, TK), lambda i, k: (i, k))],
            # Same row block for every k -> output stays VMEM-resident
            # across the reduction axis (accumulator pattern).
            out_specs=pl.BlockSpec((TM, 1), lambda i, k: (i, 0)),
            scratch_shapes=[pltpu.VMEM((TM, 1), jnp.float32)],
        ),
        compiler_params=pltpu.CompilerParams(
            dimension_semantics=("parallel", "arbitrary"),
            vmem_limit_bytes=vmem_limit,
        ),
        cost_estimate=pl.CostEstimate(
            flops=int(R) * int(L),
            transcendentals=0,
            bytes_accessed=int(R * L * itemsize + R * itemsize),
        ),
    )(x2d)
    return out[:, 0]


def mean_3out(inputs):
    """Equivalent of Mean_3out.forward: tuple of 3 (B,C,L) tensors -> 3x (B,C)."""
    outs = []
    for t in inputs:
        B, C = int(t.shape[0]), int(t.shape[1])
        x2d = t.reshape(B * C, -1)   # contiguous reshape, no extra HBM pass
        outs.append(mean_rows(x2d).reshape(B, C))
    return tuple(outs)


if __name__ == "__main__":
    key = jax.random.PRNGKey(0)
    k1, k2, k3, k4, k5, k6, k7 = jax.random.split(key, 7)

    # Case A: shared L across the three inputs.
    a1 = jax.random.normal(k1, (2, 4, 16), dtype=jnp.float32)
    a2 = jax.random.normal(k2, (2, 8, 16), dtype=jnp.float32)
    a3 = jax.random.normal(k3, (2, 4, 16), dtype=jnp.float32)
    oa = mean_3out((a1, a2, a3))
    jax.block_until_ready(oa)

    # Case B: mixed L per input.
    b1 = jax.random.normal(k4, (2, 4, 16), dtype=jnp.float32)
    b2 = jax.random.normal(k5, (2, 8, 32), dtype=jnp.float32)
    b3 = jax.random.normal(k6, (2, 4, 8), dtype=jnp.float32)
    ob = mean_3out((b1, b2, b3))
    jax.block_until_ready(ob)

    # Cross-check against plain-JAX reference.
    for out, ref_in in zip(oa + ob, (a1, a2, a3, b1, b2, b3)):
        ref = jnp.mean(ref_in, axis=2)
        assert out.shape == ref.shape
        assert jnp.allclose(out, ref, atol=1e-5, rtol=1e-5)

    # Also exercise the tiled-L + tail-mask path (unaligned L split into
    # 128-wide blocks) by shrinking the block budget.
    c = jax.random.normal(k7, (2, 4, 300), dtype=jnp.float32)
    oc = mean_rows(c.reshape(8, 300), block_bytes=4096).reshape(2, 4)
    jax.block_until_ready(oc)
    assert jnp.allclose(oc, jnp.mean(c, axis=2), atol=1e-5, rtol=1e-5)

    print("KERNEL_OK")
</pallas_src>

<mosaic_0001>
module attributes {stable_mosaic.version = 11 : i64} {
  func.func @_mean_rows_kernel(%arg0: i32, %arg1: i32, %arg2: memref<8x16xf32, #tpu.memory_space<vmem>>, %arg3: memref<8x1xf32, #tpu.memory_space<vmem>>, %arg4: memref<8x1xf32, #tpu.memory_space<vmem>>) attributes {dimension_semantics = [#tpu.dimension_semantics<parallel>, #tpu.dimension_semantics<arbitrary>], iteration_bounds = array<i64: 1, 1>, scalar_prefetch = 0 : i64, scratch_operands = 1 : i64, tpu.core_type = #tpu.core_type<tc>, window_params = [{transform_indices = @transform_0, window_bounds = array<i64: 8, 16>}, {transform_indices = @transform_1, window_bounds = array<i64: 8, 1>}]} {
    %c0_i32 = arith.constant 0 : i32
    %0 = arith.cmpi eq, %arg1, %c0_i32 : i32
    %1 = arith.extui %0 : i1 to i32
    %c0_i32_0 = arith.constant 0 : i32
    %2 = arith.cmpi ne, %1, %c0_i32_0 : i32
    scf.if %2 {
      %cst_8 = arith.constant 0.000000e+00 : f32
      %12 = vector.broadcast %cst_8 : f32 to vector<8x1xf32>
      %c0_9 = arith.constant 0 : index
      %c0_10 = arith.constant 0 : index
      %13 = vector.load %arg4[%c0_9, %c0_10] : memref<8x1xf32, #tpu.memory_space<vmem>>, vector<8x1xf32>
      tpu.vector_store %arg4[%c0_9, %c0_10], %12 {strides = array<i32>} : memref<8x1xf32, #tpu.memory_space<vmem>>, vector<8x1xf32>,
    } else {
    }
    %c0 = arith.constant 0 : index
    %c0_1 = arith.constant 0 : index
    %3 = vector.load %arg2[%c0, %c0_1] : memref<8x16xf32, #tpu.memory_space<vmem>>, vector<8x16xf32>
    %c0_2 = arith.constant 0 : index
    %c0_3 = arith.constant 0 : index
    %4 = vector.load %arg4[%c0_2, %c0_3] : memref<8x1xf32, #tpu.memory_space<vmem>>, vector<8x1xf32>
    %cst = arith.constant dense<0.000000e+00> : vector<8xf32>
    %5 = vector.multi_reduction <add>, %3, %cst [1] : vector<8x16xf32> to vector<8xf32>
    %6 = vector.shape_cast %5 : vector<8xf32> to vector<8x1xf32>
    %7 = arith.addf %4, %6 : vector<8x1xf32>
    %c0_4 = arith.constant 0 : index
    %c0_5 = arith.constant 0 : index
    %8 = vector.load %arg4[%c0_4, %c0_5] : memref<8x1xf32, #tpu.memory_space<vmem>>, vector<8x1xf32>
    tpu.vector_store %arg4[%c0_4, %c0_5], %7 {strides = array<i32>} : memref<8x1xf32, #tpu.memory_space<vmem>>, vector<8x1xf32>,
    %c0_i32_6 = arith.constant 0 : i32
    %9 = arith.cmpi eq, %arg1, %c0_i32_6 : i32
    %10 = arith.extui %9 : i1 to i32
    %c0_i32_7 = arith.constant 0 : i32
    %11 = arith.cmpi ne, %10, %c0_i32_7 : i32
    scf.if %11 {
      %c0_8 = arith.constant 0 : index
      %c0_9 = arith.constant 0 : index
      %12 = vector.load %arg4[%c0_8, %c0_9] : memref<8x1xf32, #tpu.memory_space<vmem>>, vector<8x1xf32>
      %cst_10 = arith.constant 6.250000e-02 : f32
      %13 = vector.broadcast %cst_10 : f32 to vector<8x1xf32>
      %14 = arith.mulf %12, %13 : vector<8x1xf32>
      %c0_11 = arith.constant 0 : index
      %c0_12 = arith.constant 0 : index
      %15 = vector.load %arg3[%c0_11, %c0_12] : memref<8x1xf32, #tpu.memory_space<vmem>>, vector<8x1xf32>
      tpu.vector_store %arg3[%c0_11, %c0_12], %14 {strides = array<i32>} : memref<8x1xf32, #tpu.memory_space<vmem>>, vector<8x1xf32>,
    } else {
    }
    return
  }
  func.func @transform_0(%arg0: i32, %arg1: i32) -> (i32, i32) {
    %c0_i32 = arith.constant 0 : i32
    return %arg0, %arg1 : i32, i32
  }
  func.func @transform_1(%arg0: i32, %arg1: i32) -> (i32, i32) {
    %c0_i32 = arith.constant 0 : i32
    %c0_i32_0 = arith.constant 0 : i32
    return %arg0, %c0_i32 : i32, i32
  }
}

</mosaic_0001>

<bundles_post_ra>
// kernel: tpu_custom_call.1
= control target key start
LH: loop header
LB: loop body
LE: loop exit
PB: predicated region body
PF: predicated region fallthrough
CT: control target
= control target key end

     0   :  { %6 = vsyncpa [#allocation4], 0  ;;  %s76_s9 = smov [#allocation3]   ;;  %s94_s0 = inlined_call_operand.hbm [shape: f32[8,16], index: 0, kind: input, shape index: {}]   ;;  %s95_s1 = inlined_call_operand.vmem [shape: f32[8,1], index: 1, kind: output, shape index: {}]  }
   0x1   :  { %s12_s8 = sshll.u32 %s94_s0, 4  ;;  %s14_s10 = sshll.u32 %s76_s9, 4  ;;  %s13_s8 = int_to_ptr.hbm [resolvable:$true] %s12_s8  ;;  %s15_s10 = int_to_ptr.vmem [resolvable:$true] %s14_s10 }
   0x2   :  { %17 = dma.hbm_to_vmem [thread:$0]  %s13_s8, 128, %s15_s10, [#allocation4]  }
   0x3   :  { %74 = dma.done.wait [#allocation4], 128  }
   0x4   :  { %75 = vsyncadd [#allocation4], 4294967168  ;;  %vm26_vm0 = vcmask 7168   ;;  %v77_v0 = vmov 0.0   ;;  %vm30_vm1 = vcmask 130048   ;;  %v28_v1 = vld [vmem:[#allocation3] sm:$0xff] }
   0x5   :  { %27 = vst.msk [vmem:[#allocation2] sm:$0xff] %vm26_vm0, %v77_v0  ;;  %v31_v2 = vsel %vm30_vm1, %v28_v1, 0.0 }
   0x6   :  { %32 = vadd.xlane.f32.xlu0 %v31_v2 }
   0xc   :  { %v29_v3 = vld [vmem:[#allocation2] sm:$0xff] }
  0x79   :  { %v33_v4 = vpop.xlane.xlu0 %32 }
  0x7a   :  { %v34_v5 = vadd.f32 %v33_v4, %v29_v3 }
  0x7c   :  { %36 = vst.msk [vmem:[#allocation2] sm:$0xff] %vm26_vm0, %v34_v5 }
  0x83   :  { %v40_v6 = vld [vmem:[#allocation2] sm:$0xff] }
  0x84   :  { %v41_v7 = vmul.f32 0.0625, %v40_v6 }
  0x86   :  { %42 = vst.msk [vmem:[%s95_s1] sm:$0xff] %vm26_vm0, %v41_v7 }
  0x87   :  { %47 = vsyncpa [#allocation4], 1 }

</bundles_post_ra>
